<compile_context>
chip_gen: v7x
topology: tpu7x:2x2x1
jax: 0.10.0
libtpu: 0.0.40
codegen_flags: <defaults>
</compile_context>

<pallas_src>
import jax
import jax.numpy as jnp
from jax.experimental import pallas as pl
from jax.experimental.pallas import tpu as pltpu

LANE = 128      # lane width
SUBLANE = 8     # f32 sublane group


def _make_kernel(n_in_p, relu_flags, num_classes, compute_dtype):
    """Fused MLP+classifier chain.  refs = (x, weight_slab, out)."""

    def kernel(x_ref, w_ref, out_ref):
        h = x_ref[...].astype(jnp.float32)                 # (Bblk, n_in_p) f32
        for i, use_relu in enumerate(relu_flags):          # static unroll (6 layers)
            if i == 0:
                w = w_ref[0, :n_in_p, :]                   # (n_in_p, 128) -> no lane-pad of x needed
            else:
                w = w_ref[i]                               # (128, 128); pad rows/lanes are zero
            b = w_ref[i, LANE - 1:LANE, :]                 # (1, 128) bias row
            h = jnp.dot(h.astype(compute_dtype), w,
                        preferred_element_type=jnp.float32)
            h = h + b.astype(jnp.float32)                  # explicit bias add (VPU, free)
            if use_relu:
                h = jnp.maximum(h, 0.0)
        out_ref[...] = h[:, :num_classes].astype(out_ref.dtype)

    return kernel


def pack_params(layers, dtype):
    """Pack [(W(in,out), b(out,), relu), ...] into one zero-padded (L,128,128) slab.

    Tile layout per layer: rows 0..in-1, cols 0..out-1 hold W; row 127 cols 0..out-1 hold b;
    everything else is 0 (so padded activation lanes stay exactly zero through every layer).
    """
    n_layers = len(layers)
    slab = jnp.zeros((n_layers, LANE, LANE), jnp.float32)
    for i, (w, b, _) in enumerate(layers):
        fan_in, fan_out = w.shape
        assert fan_in <= LANE - 1 and fan_out <= LANE - 1, "single-tile scheme needs dims <= 127"
        tile = jnp.zeros((LANE, LANE), jnp.float32)
        tile = tile.at[:fan_in, :fan_out].set(w.astype(jnp.float32))
        tile = tile.at[LANE - 1, :fan_out].set(jnp.reshape(b, (-1,)).astype(jnp.float32))
        slab = slab.at[i].set(tile)
    return slab.astype(dtype)


def wholefish_forward(x, layers, *, batch_block=2048, compute_dtype=jnp.bfloat16):
    """x: (B, n_inputs) float.  layers: list of (W(in,out), b(out,), relu_flag).

    compute_dtype: jnp.bfloat16 for v6e/v7x (MXU-native), jnp.float32 recommended on v5e.
    """
    B, n_in = x.shape
    num_classes = layers[-1][0].shape[1]
    relu_flags = tuple(flag for _, _, flag in layers)
    n_layers = len(layers)

    # Feature dim padded only to a sublane-packing-friendly multiple of 16 (NOT 128).
    n_in_p = ((n_in + 15) // 16) * 16
    assert n_in_p <= LANE - 1, "n_inputs too large for the single-tile packing scheme"

    slab = pack_params(layers, compute_dtype)

    # Pad batch: at least one full sublane group; if tiling, a multiple of the block.
    B_pad = max(SUBLANE, ((B + SUBLANE - 1) // SUBLANE) * SUBLANE)
    use_grid = B_pad > batch_block
    if use_grid:
        B_pad = ((B_pad + batch_block - 1) // batch_block) * batch_block

    # Only pad when actually needed (keeps the wrapper free of extra HBM round-trips for
    # aligned inputs; even when needed it is n_in-wide, not 128-wide).
    if (B_pad != B) or (n_in_p != n_in):
        x_in = jnp.zeros((B_pad, n_in_p), jnp.float32).at[:B, :n_in].set(x.astype(jnp.float32))
    else:
        x_in = x.astype(jnp.float32)

    kernel = _make_kernel(n_in_p, relu_flags, num_classes, compute_dtype)
    out_shape = jax.ShapeDtypeStruct((B_pad, num_classes), jnp.float32)

    if not use_grid:
        # Grid-less: whole problem is one VMEM-resident block, two input DMAs total.
        out_pad = pl.pallas_call(
            kernel,
            out_shape=out_shape,
            in_specs=[
                pl.BlockSpec(memory_space=pltpu.MemorySpace.VMEM),
                pl.BlockSpec(memory_space=pltpu.MemorySpace.VMEM),
            ],
            out_specs=pl.BlockSpec(memory_space=pltpu.MemorySpace.VMEM),
        )(x_in, slab)
    else:
        # Large batch: tile the batch axis, shard across TensorCores; weight slab has a
        # constant index_map so it stays resident in VMEM across grid steps.
        grid = (B_pad // batch_block,)
        out_pad = pl.pallas_call(
            kernel,
            out_shape=out_shape,
            grid=grid,
            in_specs=[
                pl.BlockSpec((batch_block, n_in_p), lambda i: (i, 0)),
                pl.BlockSpec((n_layers, LANE, LANE), lambda i: (0, 0, 0)),
            ],
            out_specs=pl.BlockSpec((batch_block, num_classes), lambda i: (i, 0)),
            compiler_params=pltpu.CompilerParams(
                dimension_semantics=("parallel",)),
        )(x_in, slab)

    return out_pad[:B]


def init_linear(key, fan_in, fan_out):
    """Deterministic init mimicking PyTorch nn.Linear default (uniform +-1/sqrt(fan_in))."""
    kw, kb = jax.random.split(key)
    bound = 1.0 / (fan_in ** 0.5)
    w = jax.random.uniform(kw, (fan_in, fan_out), jnp.float32, -bound, bound)
    b = jax.random.uniform(kb, (fan_out,), jnp.float32, -bound, bound)
    return w, b


def build_wholefish_params(key, n_inputs, mlp_width, mlp_depth, num_classes):
    layers = []
    keys = jax.random.split(key, mlp_depth + 1)
    # MLP.input + ReLU
    w, b = init_linear(keys[0], n_inputs, mlp_width)
    layers.append((w, b, True))
    # MLP.hiddens (mlp_depth - 2 of them) + ReLU
    for i in range(mlp_depth - 2):
        w, b = init_linear(keys[1 + i], mlp_width, mlp_width)
        layers.append((w, b, True))
    # MLP.output (no activation) -> featurizer output of width mlp_width
    w, b = init_linear(keys[mlp_depth - 1], mlp_width, mlp_width)
    layers.append((w, b, False))
    # Classifier: nn.Linear(mlp_width, num_classes)
    w, b = init_linear(keys[mlp_depth], mlp_width, num_classes)
    layers.append((w, b, False))
    return layers


def reference_forward_f32(x, layers):
    h = x.astype(jnp.float32)
    for w, b, use_relu in layers:
        h = h @ w + b
        if use_relu:
            h = jnp.maximum(h, 0.0)
    return h


def reference_forward_emulated(x, layers, compute_dtype):
    """Reference that emulates the kernel's bf16-operand / f32-accumulation numerics."""
    h = x.astype(jnp.float32)
    for w, b, use_relu in layers:
        h = jnp.dot(h.astype(compute_dtype), w.astype(compute_dtype),
                    preferred_element_type=jnp.float32)
        h = h + b.astype(compute_dtype).astype(jnp.float32)
        if use_relu:
            h = jnp.maximum(h, 0.0)
    return h


if __name__ == "__main__":
    # Small shapes consistent with the MLP branch of WholeFish.
    batch = 4
    n_inputs = 16      # input_shape = (16,) -> len(input_shape) <= 2 -> MLP featurizer
    mlp_width = 32
    mlp_depth = 5
    num_classes = 8
    compute_dtype = jnp.bfloat16   # use jnp.float32 on v5e

    key = jax.random.PRNGKey(0)
    kx, kp = jax.random.split(key)
    x = jax.random.normal(kx, (batch, n_inputs), jnp.float32)
    layers = build_wholefish_params(kp, n_inputs, mlp_width, mlp_depth, num_classes)

    out = wholefish_forward(x, layers, compute_dtype=compute_dtype)
    out = jax.block_until_ready(out)
    assert out.shape == (batch, num_classes)

    # Tight check against a reference with the same bf16-operand / f32-accumulation numerics.
    ref_emu = reference_forward_emulated(x, layers, compute_dtype)
    assert jnp.allclose(out, ref_emu, atol=2e-3, rtol=2e-3)

    # Looser sanity check against the pure-f32 reference (bf16 weight/activation rounding).
    ref_f32 = reference_forward_f32(x, layers)
    assert jnp.allclose(out, ref_f32, atol=6e-2, rtol=6e-2)

    print("KERNEL_OK")
</pallas_src>

<mosaic_0001>
module attributes {stable_mosaic.version = 11 : i64} {
  func.func @kernel(%arg0: memref<8x16xf32, #tpu.memory_space<vmem>>, %arg1: memref<6x128x128xbf16, #tpu.memory_space<vmem>>, %arg2: memref<8x8xf32, #tpu.memory_space<vmem>>) attributes {dimension_semantics = [], scalar_prefetch = 0 : i64, scratch_operands = 0 : i64, tpu.core_type = #tpu.core_type<tc>} {
    %c0 = arith.constant 0 : index
    %c0_0 = arith.constant 0 : index
    %0 = vector.load %arg0[%c0, %c0_0] : memref<8x16xf32, #tpu.memory_space<vmem>>, vector<8x16xf32>
    %c0_1 = arith.constant 0 : index
    %c0_2 = arith.constant 0 : index
    %c0_3 = arith.constant 0 : index
    %1 = vector.load %arg1[%c0_1, %c0_2, %c0_3] : memref<6x128x128xbf16, #tpu.memory_space<vmem>>, vector<1x16x128xbf16>
    %2 = vector.shape_cast %1 : vector<1x16x128xbf16> to vector<16x128xbf16>
    %c0_4 = arith.constant 0 : index
    %c127 = arith.constant 127 : index
    %c0_5 = arith.constant 0 : index
    %3 = vector.load %arg1[%c0_4, %c127, %c0_5] : memref<6x128x128xbf16, #tpu.memory_space<vmem>>, vector<1x1x128xbf16>
    %4 = vector.shape_cast %3 : vector<1x1x128xbf16> to vector<1x128xbf16>
    %5 = arith.truncf %0 : vector<8x16xf32> to vector<8x16xbf16>
    %cst = arith.constant dense<0.000000e+00> : vector<8x128xf32>
    %6 = tpu.matmul %5, %2, %cst {dimension_numbers = #tpu.dot_dimension_numbers<[1], [0], [0], [1], [0, 0, 1, 1], [], []>} : vector<8x16xbf16>, vector<16x128xbf16>, vector<8x128xf32> -> vector<8x128xf32>
    %7 = arith.extf %4 : vector<1x128xbf16> to vector<1x128xf32>
    %8 = vector.broadcast %7 : vector<1x128xf32> to vector<8x128xf32>
    %9 = arith.addf %6, %8 : vector<8x128xf32>
    %cst_6 = arith.constant 0.000000e+00 : f32
    %10 = vector.broadcast %cst_6 : f32 to vector<8x128xf32>
    %11 = arith.maximumf %9, %10 : vector<8x128xf32>
    %c1 = arith.constant 1 : index
    %c0_7 = arith.constant 0 : index
    %c0_8 = arith.constant 0 : index
    %12 = vector.load %arg1[%c1, %c0_7, %c0_8] : memref<6x128x128xbf16, #tpu.memory_space<vmem>>, vector<1x128x128xbf16>
    %13 = vector.shape_cast %12 : vector<1x128x128xbf16> to vector<128x128xbf16>
    %c1_9 = arith.constant 1 : index
    %c127_10 = arith.constant 127 : index
    %c0_11 = arith.constant 0 : index
    %14 = vector.load %arg1[%c1_9, %c127_10, %c0_11] : memref<6x128x128xbf16, #tpu.memory_space<vmem>>, vector<1x1x128xbf16>
    %15 = vector.shape_cast %14 : vector<1x1x128xbf16> to vector<1x128xbf16>
    %16 = arith.truncf %11 : vector<8x128xf32> to vector<8x128xbf16>
    %cst_12 = arith.constant dense<0.000000e+00> : vector<8x128xf32>
    %17 = tpu.matmul %16, %13, %cst_12 {dimension_numbers = #tpu.dot_dimension_numbers<[1], [0], [0], [1], [0, 0, 1, 1], [], []>} : vector<8x128xbf16>, vector<128x128xbf16>, vector<8x128xf32> -> vector<8x128xf32>
    %18 = arith.extf %15 : vector<1x128xbf16> to vector<1x128xf32>
    %19 = vector.broadcast %18 : vector<1x128xf32> to vector<8x128xf32>
    %20 = arith.addf %17, %19 : vector<8x128xf32>
    %cst_13 = arith.constant 0.000000e+00 : f32
    %21 = vector.broadcast %cst_13 : f32 to vector<8x128xf32>
    %22 = arith.maximumf %20, %21 : vector<8x128xf32>
    %c2 = arith.constant 2 : index
    %c0_14 = arith.constant 0 : index
    %c0_15 = arith.constant 0 : index
    %23 = vector.load %arg1[%c2, %c0_14, %c0_15] : memref<6x128x128xbf16, #tpu.memory_space<vmem>>, vector<1x128x128xbf16>
    %24 = vector.shape_cast %23 : vector<1x128x128xbf16> to vector<128x128xbf16>
    %c2_16 = arith.constant 2 : index
    %c127_17 = arith.constant 127 : index
    %c0_18 = arith.constant 0 : index
    %25 = vector.load %arg1[%c2_16, %c127_17, %c0_18] : memref<6x128x128xbf16, #tpu.memory_space<vmem>>, vector<1x1x128xbf16>
    %26 = vector.shape_cast %25 : vector<1x1x128xbf16> to vector<1x128xbf16>
    %27 = arith.truncf %22 : vector<8x128xf32> to vector<8x128xbf16>
    %cst_19 = arith.constant dense<0.000000e+00> : vector<8x128xf32>
    %28 = tpu.matmul %27, %24, %cst_19 {dimension_numbers = #tpu.dot_dimension_numbers<[1], [0], [0], [1], [0, 0, 1, 1], [], []>} : vector<8x128xbf16>, vector<128x128xbf16>, vector<8x128xf32> -> vector<8x128xf32>
    %29 = arith.extf %26 : vector<1x128xbf16> to vector<1x128xf32>
    %30 = vector.broadcast %29 : vector<1x128xf32> to vector<8x128xf32>
    %31 = arith.addf %28, %30 : vector<8x128xf32>
    %cst_20 = arith.constant 0.000000e+00 : f32
    %32 = vector.broadcast %cst_20 : f32 to vector<8x128xf32>
    %33 = arith.maximumf %31, %32 : vector<8x128xf32>
    %c3 = arith.constant 3 : index
    %c0_21 = arith.constant 0 : index
    %c0_22 = arith.constant 0 : index
    %34 = vector.load %arg1[%c3, %c0_21, %c0_22] : memref<6x128x128xbf16, #tpu.memory_space<vmem>>, vector<1x128x128xbf16>
    %35 = vector.shape_cast %34 : vector<1x128x128xbf16> to vector<128x128xbf16>
    %c3_23 = arith.constant 3 : index
    %c127_24 = arith.constant 127 : index
    %c0_25 = arith.constant 0 : index
    %36 = vector.load %arg1[%c3_23, %c127_24, %c0_25] : memref<6x128x128xbf16, #tpu.memory_space<vmem>>, vector<1x1x128xbf16>
    %37 = vector.shape_cast %36 : vector<1x1x128xbf16> to vector<1x128xbf16>
    %38 = arith.truncf %33 : vector<8x128xf32> to vector<8x128xbf16>
    %cst_26 = arith.constant dense<0.000000e+00> : vector<8x128xf32>
    %39 = tpu.matmul %38, %35, %cst_26 {dimension_numbers = #tpu.dot_dimension_numbers<[1], [0], [0], [1], [0, 0, 1, 1], [], []>} : vector<8x128xbf16>, vector<128x128xbf16>, vector<8x128xf32> -> vector<8x128xf32>
    %40 = arith.extf %37 : vector<1x128xbf16> to vector<1x128xf32>
    %41 = vector.broadcast %40 : vector<1x128xf32> to vector<8x128xf32>
    %42 = arith.addf %39, %41 : vector<8x128xf32>
    %cst_27 = arith.constant 0.000000e+00 : f32
    %43 = vector.broadcast %cst_27 : f32 to vector<8x128xf32>
    %44 = arith.maximumf %42, %43 : vector<8x128xf32>
    %c4 = arith.constant 4 : index
    %c0_28 = arith.constant 0 : index
    %c0_29 = arith.constant 0 : index
    %45 = vector.load %arg1[%c4, %c0_28, %c0_29] : memref<6x128x128xbf16, #tpu.memory_space<vmem>>, vector<1x128x128xbf16>
    %46 = vector.shape_cast %45 : vector<1x128x128xbf16> to vector<128x128xbf16>
    %c4_30 = arith.constant 4 : index
    %c127_31 = arith.constant 127 : index
    %c0_32 = arith.constant 0 : index
    %47 = vector.load %arg1[%c4_30, %c127_31, %c0_32] : memref<6x128x128xbf16, #tpu.memory_space<vmem>>, vector<1x1x128xbf16>
    %48 = vector.shape_cast %47 : vector<1x1x128xbf16> to vector<1x128xbf16>
    %49 = arith.truncf %44 : vector<8x128xf32> to vector<8x128xbf16>
    %cst_33 = arith.constant dense<0.000000e+00> : vector<8x128xf32>
    %50 = tpu.matmul %49, %46, %cst_33 {dimension_numbers = #tpu.dot_dimension_numbers<[1], [0], [0], [1], [0, 0, 1, 1], [], []>} : vector<8x128xbf16>, vector<128x128xbf16>, vector<8x128xf32> -> vector<8x128xf32>
    %51 = arith.extf %48 : vector<1x128xbf16> to vector<1x128xf32>
    %52 = vector.broadcast %51 : vector<1x128xf32> to vector<8x128xf32>
    %53 = arith.addf %50, %52 : vector<8x128xf32>
    %c5 = arith.constant 5 : index
    %c0_34 = arith.constant 0 : index
    %c0_35 = arith.constant 0 : index
    %54 = vector.load %arg1[%c5, %c0_34, %c0_35] : memref<6x128x128xbf16, #tpu.memory_space<vmem>>, vector<1x128x128xbf16>
    %55 = vector.shape_cast %54 : vector<1x128x128xbf16> to vector<128x128xbf16>
    %c5_36 = arith.constant 5 : index
    %c127_37 = arith.constant 127 : index
    %c0_38 = arith.constant 0 : index
    %56 = vector.load %arg1[%c5_36, %c127_37, %c0_38] : memref<6x128x128xbf16, #tpu.memory_space<vmem>>, vector<1x1x128xbf16>
    %57 = vector.shape_cast %56 : vector<1x1x128xbf16> to vector<1x128xbf16>
    %58 = arith.truncf %53 : vector<8x128xf32> to vector<8x128xbf16>
    %cst_39 = arith.constant dense<0.000000e+00> : vector<8x128xf32>
    %59 = tpu.matmul %58, %55, %cst_39 {dimension_numbers = #tpu.dot_dimension_numbers<[1], [0], [0], [1], [0, 0, 1, 1], [], []>} : vector<8x128xbf16>, vector<128x128xbf16>, vector<8x128xf32> -> vector<8x128xf32>
    %60 = arith.extf %57 : vector<1x128xbf16> to vector<1x128xf32>
    %61 = vector.broadcast %60 : vector<1x128xf32> to vector<8x128xf32>
    %62 = arith.addf %59, %61 : vector<8x128xf32>
    %63 = vector.extract_strided_slice %62 {offsets = [0, 0], sizes = [8, 8], strides = [1, 1]} : vector<8x128xf32> to vector<8x8xf32>
    %c0_40 = arith.constant 0 : index
    %c0_41 = arith.constant 0 : index
    %64 = vector.load %arg2[%c0_40, %c0_41] : memref<8x8xf32, #tpu.memory_space<vmem>>, vector<8x8xf32>
    tpu.vector_store %arg2[%c0_40, %c0_41], %63 {strides = array<i32>} : memref<8x8xf32, #tpu.memory_space<vmem>>, vector<8x8xf32>,
    return
  }
}

</mosaic_0001>

<bundles_post_ra>
// kernel: tpu_custom_call.1
= control target key start
LH: loop header
LB: loop body
LE: loop exit
PB: predicated region body
PF: predicated region fallthrough
CT: control target
= control target key end

     0   :  { %7 = vsyncpa [#allocation3], 0  ;;  %s1122_s0 = inlined_call_operand.hbm [shape: f32[8,16], index: 0, kind: input, shape index: {}]   ;;  %s1123_s1 = inlined_call_operand.hbm [shape: bf16[6,128,128], index: 1, kind: input, shape index: {}]   ;;  %s1124_s2 = inlined_call_operand.hbm [shape: f32[8,8], index: 2, kind: output, shape index: {}]  }
   0x1   :  { %8 = vsyncpa [#allocation6], 0 }
   0x2   :  { %9 = vsyncpa [#allocation4], 0  ;;  %s996_s9 = smov [#allocation2]   ;;  %s997_s11 = smov [#allocation5]  }
   0x3   :  { %s16_s10 = sshll.u32 %s996_s9, 4  ;;  %s25_s12 = sshll.u32 %s997_s11, 4  ;;  %s17_s10 = int_to_ptr.vmem [resolvable:$true] %s16_s10  ;;  %s1018_s12 = int_to_ptr.vmem [resolvable:$true] %s25_s12 }
   0x4   :  { %s924_s15 = scalar_lea.hbm %s1122_s0, 128 }
   0x5   :  { %p925_p0 = scmp.ne.s32.totalorder %s1122_s0, %s924_s15  ;;  %p928_p1 = scmp.lt.u32.totalorder %s924_s15, %s1122_s0 }
   0x7   :  { %p930_p2 = pnand %p928_p1, %p925_p0 }
   0x9   :  { %933 = shalt.err (!%p930_p2)
}
   0xa   :  { %s934_s20 = scalar_lea.vmem %s17_s10, 128  ;;  %p939_p4 = scmp.lt.s32.totalorder %s17_s10, %s17_s10 }
   0xb   :  { %p935_p3 = scmp.ne.s32.totalorder %s17_s10, %s934_s20  ;;  %p940_p5 = scmp.lt.s32.totalorder %s934_s20, %s934_s20 }
   0xd   :  { %p941_p6 = por %p940_p5, %p939_p4 }
   0xf   :  { %p942_p7 = pnand %p941_p6, %p935_p3 }
  0x11   :  { %945 = shalt.err (!%p942_p7)
}
  0x12   :  { %19 = dma.hbm_to_vmem [thread:$0]  %s1122_s0, 128, %s17_s10, [#allocation3]  }
  0x13   :  { %s946_s25 = scalar_lea.hbm %s1123_s1, 6144 }
  0x14   :  { %p947_p8 = scmp.ne.s32.totalorder %s1123_s1, %s946_s25  ;;  %p950_p9 = scmp.lt.u32.totalorder %s946_s25, %s1123_s1 }
  0x16   :  { %p952_p10 = pnand %p950_p9, %p947_p8 }
  0x18   :  { %955 = shalt.err (!%p952_p10)
}
  0x19   :  { %s956_s30 = scalar_lea.vmem %s1018_s12, 6144  ;;  %p961_p12 = scmp.lt.s32.totalorder %s1018_s12, %s1018_s12 }
  0x1a   :  { %p957_p11 = scmp.ne.s32.totalorder %s1018_s12, %s956_s30  ;;  %p962_p13 = scmp.lt.s32.totalorder %s956_s30, %s956_s30 }
  0x1c   :  { %p963_p0 = por %p962_p13, %p961_p12 }
  0x1e   :  { %p964_p1 = pnand %p963_p0, %p957_p11 }
  0x20   :  { %967 = shalt.err (!%p964_p1)
}
  0x21   :  { %s998_s0 = smov 64   ;;  %s999_s3 = smov 4  }
  0x22   :  { %31 = dma.hbm_to_vmem [thread:$0]  %s1123_s1, 6144, %s1018_s12, [#allocation6], %s998_s0, %s998_s0, %s999_s3  }
  0x23   :  { %990 = dma.done.wait [#allocation3], 128  }
  0x24   :  { %991 = vsyncadd [#allocation3], 4294967168 }
  0x25   :  { %992 = dma.done.wait [#allocation6], 6144  }
  0x26   :  { %993 = vsyncadd [#allocation6], 4294961152  ;;  %v1000_v0 = vmov 0.0   ;;  %vm1001_vm0 = vmmov 0   ;;  %v883_v1 = vld [vmem:[#allocation5] sm:$0xff]   ;;  %v39_v2 = vld [vmem:[#allocation2] sm:$0xff]  ;;  %v45_v18 = vlaneseq }
  0x27   :  { %770 = vmatprep.subr.bf16.mxu0 %v1000_v0  ;;  %772 = vmatprep.mubr.msk.bf16.mxu0 %vm1001_vm0, %v1000_v0  ;;  %v43_v3 = vpack.c.bf16 %v39_v2, %v39_v2  ;;  %vm55_vm1 = vcmask 130048   ;;  %v884_v4 = vld [vmem:[#allocation5 + $0x40] sm:$0xff]   ;;  %v885_v5 = vld [vmem:[#allocation5 + $0x48] sm:$0xff]   ;;  %v886_v6 = vld [vmem:[#allocation5 + $0x50] sm:$0xff]   ;;  %s1002_s1 = smov [#allocation7]   ;;  %vm663_vm2 = vcmask 64512  }
  0x28   :  { %776 = vmatprep.subr.bf16.mxu1 %v1000_v0  ;;  %792 = vmatprep.mubr.msk.bf16.mxu1 %vm1001_vm0, %v1000_v0  ;;  %v887_v7 = vld [vmem:[#allocation5 + $0x58] sm:$0xff]   ;;  %v888_v8 = vld [vmem:[#allocation5 + $0x60] sm:$0xff]   ;;  %v889_v9 = vld [vmem:[#allocation5 + $0x68] sm:$0xff]   ;;  %v46_v19 = vshrl.u32 %v45_v18, 7  ;;  %s671_s6 = sshll.u32 %s1002_s1, 4  ;;  %s672_s6 = int_to_ptr.vmem [resolvable:$true] %s671_s6 }
  0x29   :  { %771 = vmatpush3.bf16.msra.mxu0 %v883_v1  ;;  %777 = vmatpush3.bf16.msra.mxu1 %v884_v4  ;;  %v890_v10 = vld [vmem:[#allocation5 + $0x70] sm:$0xff]   ;;  %v891_v11 = vld [vmem:[#allocation5 + $0x78] sm:$0xff]   ;;  %v892_v12 = vld [vmem:[#allocation5 + $0x80] sm:$0xff]   ;;  %s968_s7 = scalar_lea.vmem %s672_s6, 128  ;;  %p973_p3 = scmp.lt.s32.totalorder %s672_s6, %s672_s6 }
  0x2a   :  { %796 = vmatprep.subr.bf16.mxu0 %v1000_v0  ;;  %778 = vmatprep.subr.bf16.mxu1 %v1000_v0  ;;  %v893_v13 = vld [vmem:[#allocation5 + $0x88] sm:$0xff]   ;;  %v894_v14 = vld [vmem:[#allocation5 + $0x90] sm:$0xff]   ;;  %v895_v15 = vld [vmem:[#allocation5 + $0x98] sm:$0xff]   ;;  %v1072_v22 = vsub.s32 7, %v46_v19  ;;  %p969_p2 = scmp.ne.s32.totalorder %s672_s6, %s968_s7  ;;  %p974_p4 = scmp.lt.s32.totalorder %s968_s7, %s968_s7 }
  0x2b   :  { %v896_v16 = vld [vmem:[#allocation5 + $0xa0] sm:$0xff]   ;;  %v897_v17 = vld [vmem:[#allocation5 + $0xa8] sm:$0xff]   ;;  %v42_v20 = vld [vmem:[#allocation5 + $0x3c] sm:$0x8] }
  0x2c   :  { %773 = vmatmul.mubr.msk.bf16.vlgmr.msra.gmra.mrb[0].mxu0 %vm55_vm1, %v43_v3  ;;  %v44_v21 = vunpack.c.l.bf16 %v42_v20  ;;  %v898_v31 = vld [vmem:[#allocation5 + $0xb0] sm:$0xff]   ;;  %v899_v32 = vld [vmem:[#allocation5 + $0xb8] sm:$0xff]   ;;  %v900_v33 = vld [vmem:[#allocation5 + $0xc0] sm:$0xff]   ;;  %p975_p5 = por %p974_p4, %p973_p3 }
  0x2d   :  { %812 = vmatprep.mubr.msk.bf16.mxu0 %vm1001_vm0, %v1000_v0  ;;  %779 = vmatpush3.bf16.msra.mxu1 %v885_v5  ;;  %v901_v34 = vld [vmem:[#allocation5 + $0xc8] sm:$0xff]   ;;  %v902_v35 = vld [vmem:[#allocation5 + $0xd0] sm:$0xff]   ;;  %v903_v36 = vld [vmem:[#allocation5 + $0xd8] sm:$0xff]  }
  0x2e   :  { %780 = vmatprep.subr.bf16.mxu1 %v1000_v0  ;;  %797 = vmatpush3.bf16.msra.mxu0 %v892_v12  ;;  %v48_v23 = vrot.slane %v44_v21, %v1072_v22  ;;  %v904_v37 = vld [vmem:[#allocation5 + $0xe0] sm:$0xff]   ;;  %v905_v38 = vld [vmem:[#allocation5 + $0xe8] sm:$0xff]   ;;  %v117_v39 = vld [vmem:[#allocation5 + $0x7c] sm:$0x8]  ;;  %p976_p6 = pnand %p975_p5, %p969_p2 }
  0x2f   :  { %798 = vmatprep.subr.bf16.mxu0 %v1000_v0  ;;  %v119_v40 = vunpack.c.l.bf16 %v117_v39  ;;  %v906_v49 = vld [vmem:[#allocation5 + $0xf0] sm:$0xff]   ;;  %v907_v50 = vld [vmem:[#allocation5 + $0xf8] sm:$0xff]   ;;  %v908_v51 = vld [vmem:[#allocation5 + $0x100] sm:$0xff]  }
  0x30   :  { %v909_v52 = vld [vmem:[#allocation5 + $0x108] sm:$0xff]   ;;  %v910_v53 = vld [vmem:[#allocation5 + $0x110] sm:$0xff]   ;;  %v911_v54 = vld [vmem:[#allocation5 + $0x118] sm:$0xff]  }
  0x31   :  { %781 = vmatpush3.bf16.msra.mxu1 %v886_v6  ;;  %v123_v41 = vrot.slane %v119_v40, %v1072_v22  ;;  %v912_v55 = vld [vmem:[#allocation5 + $0x120] sm:$0xff]   ;;  %v913_v56 = vld [vmem:[#allocation5 + $0x128] sm:$0xff]   ;;  %v230_v57 = vld [vmem:[#allocation5 + $0xbc] sm:$0x8] }
  0x32   :  { %782 = vmatprep.subr.bf16.mxu1 %v1000_v0  ;;  %799 = vmatpush3.bf16.msra.mxu0 %v893_v13  ;;  %v232_v58 = vunpack.c.l.bf16 %v230_v57  ;;  %v914_v4 = vld [vmem:[#allocation5 + $0x130] sm:$0xff]   ;;  %v915_v5 = vld [vmem:[#allocation5 + $0x138] sm:$0xff]   ;;  %v916_v6 = vld [vmem:[#allocation5 + $0x140] sm:$0xff]  }
  0x33   :  { %800 = vmatprep.subr.bf16.mxu0 %v1000_v0  ;;  %v922_v12 = vld [vmem:[#allocation5 + $0x170] sm:$0xff]   ;;  %v343_v13 = vld [vmem:[#allocation5 + $0xfc] sm:$0x8] }
  0x34   :  { %v236_v59 = vrot.slane %v232_v58, %v1072_v22 }
  0x35   :  { %783 = vmatpush3.bf16.msra.mxu1 %v887_v7  ;;  %v917_v7 = vld [vmem:[#allocation5 + $0x148] sm:$0xff]  }
  0x36   :  { %784 = vmatprep.subr.bf16.mxu1 %v1000_v0  ;;  %801 = vmatpush3.bf16.msra.mxu0 %v894_v14  ;;  %v345_v14 = vunpack.c.l.bf16 %v343_v13 }
  0x37   :  { %802 = vmatprep.subr.bf16.mxu0 %v1000_v0 }
  0x39   :  { %785 = vmatpush3.bf16.msra.mxu1 %v888_v8  ;;  %v918_v8 = vld [vmem:[#allocation5 + $0x150] sm:$0xff]  }
  0x3a   :  { %786 = vmatprep.subr.bf16.mxu1 %v1000_v0  ;;  %803 = vmatpush3.bf16.msra.mxu0 %v895_v15  ;;  %v349_v15 = vrot.slane %v345_v14, %v1072_v22 }
  0x3b   :  { %804 = vmatprep.subr.bf16.mxu0 %v1000_v0 }
  0x3d   :  { %787 = vmatpush3.bf16.msra.mxu1 %v889_v9  ;;  %v919_v9 = vld [vmem:[#allocation5 + $0x158] sm:$0xff]  }
  0x3e   :  { %788 = vmatprep.subr.bf16.mxu1 %v1000_v0  ;;  %805 = vmatpush3.bf16.msra.mxu0 %v896_v16 }
  0x3f   :  { %806 = vmatprep.subr.bf16.mxu0 %v1000_v0 }
  0x41   :  { %789 = vmatpush3.bf16.msra.mxu1 %v890_v10  ;;  %v920_v10 = vld [vmem:[#allocation5 + $0x160] sm:$0xff]  }
  0x42   :  { %790 = vmatprep.subr.bf16.mxu1 %v1000_v0  ;;  %807 = vmatpush3.bf16.msra.mxu0 %v897_v17 }
  0x43   :  { %808 = vmatprep.subr.bf16.mxu0 %v1000_v0 }
  0x45   :  { %791 = vmatpush3.bf16.msra.mxu1 %v891_v11  ;;  %v921_v11 = vld [vmem:[#allocation5 + $0x168] sm:$0xff]  }
  0x46   :  { %816 = vmatprep.subr.bf16.mxu1 %v1000_v0  ;;  %809 = vmatpush3.bf16.msra.mxu0 %v898_v31 }
  0x47   :  { %810 = vmatprep.subr.bf16.mxu0 %v1000_v0 }
  0x4a   :  { %811 = vmatpush3.bf16.msra.mxu0 %v899_v32 }
  0x4b   :  { %836 = vmatprep.subr.bf16.mxu0 %v1000_v0 }
  0xff   :  { %v93_v24 = vpop.f32.mrb[0].mxu0 }
 0x100   :  { %v94_v25 = vadd.f32 %v93_v24, %v48_v23  ;;  %v774_v26 = vpop.f32.mrb[1].mxu0  ;;  %v923_v24 = vld [vmem:[#allocation5 + $0x178] sm:$0xff]  }
 0x101   :  { %v96_v27 = vpop.f32.mrb[2].mxu0 }
 0x102   :  { %v99_v28 = vmax.f32 %v94_v25, 0.0  ;;  %v775_v29 = vpop.f32.mrb[3].mxu0  ;;  %v456_v25 = vld [vmem:[#allocation5 + $0x13c] sm:$0x8] }
 0x103   :  { %v458_v26 = vunpack.c.l.bf16 %v456_v25 }
 0x104   :  { %v118_v30 = vpack.c.bf16 %v99_v28, %v99_v28 }
 0x105   :  { %v462_v27 = vrot.slane %v458_v26, %v1072_v22 }
 0x106   :  { %793 = vmatmul.mubr.bf16.vlgmr.msra.gmra.mrb[0].mxu1 %v118_v30 }
 0x107   :  { %832 = vmatprep.mubr.msk.bf16.mxu1 %vm1001_vm0, %v1000_v0  ;;  %817 = vmatpush3.bf16.msra.mxu1 %v900_v33  ;;  %v568_v33 = vld [vmem:[#allocation5 + $0x17c] sm:$0x8] }
 0x108   :  { %818 = vmatprep.subr.bf16.mxu1 %v1000_v0 }
 0x10b   :  { %819 = vmatpush3.bf16.msra.mxu1 %v901_v34  ;;  %v570_v34 = vunpack.c.l.bf16 %v568_v33 }
 0x10c   :  { %820 = vmatprep.subr.bf16.mxu1 %v1000_v0 }
 0x10f   :  { %821 = vmatpush3.bf16.msra.mxu1 %v902_v35  ;;  %v574_v35 = vrot.slane %v570_v34, %v1072_v22 }
 0x110   :  { %822 = vmatprep.subr.bf16.mxu1 %v1000_v0 }
 0x113   :  { %823 = vmatpush3.bf16.msra.mxu1 %v903_v36 }
 0x114   :  { %824 = vmatprep.subr.bf16.mxu1 %v1000_v0 }
 0x117   :  { %825 = vmatpush3.bf16.msra.mxu1 %v904_v37 }
 0x118   :  { %826 = vmatprep.subr.bf16.mxu1 %v1000_v0 }
 0x11b   :  { %827 = vmatpush3.bf16.msra.mxu1 %v905_v38 }
 0x11c   :  { %828 = vmatprep.subr.bf16.mxu1 %v1000_v0 }
 0x11f   :  { %829 = vmatpush3.bf16.msra.mxu1 %v906_v49 }
 0x120   :  { %830 = vmatprep.subr.bf16.mxu1 %v1000_v0 }
 0x123   :  { %831 = vmatpush3.bf16.msra.mxu1 %v907_v50 }
 0x124   :  { %856 = vmatprep.subr.bf16.mxu1 %v1000_v0 }
 0x1d9   :  { %v206_v42 = vpop.f32.mrb[0].mxu1 }
 0x1da   :  { %v207_v43 = vadd.f32 %v206_v42, %v123_v41  ;;  %v794_v44 = vpop.f32.mrb[1].mxu1 }
 0x1db   :  { %v209_v45 = vpop.f32.mrb[2].mxu1 }
 0x1dc   :  { %v212_v46 = vmax.f32 %v207_v43, 0.0  ;;  %v795_v47 = vpop.f32.mrb[3].mxu1 }
 0x1de   :  { %v231_v48 = vpack.c.bf16 %v212_v46, %v212_v46 }
 0x1e0   :  { %813 = vmatmul.mubr.bf16.vlgmr.msra.gmra.mrb[4].mxu0 %v231_v48 }
 0x1e1   :  { %852 = vmatprep.mubr.msk.bf16.mxu0 %vm1001_vm0, %v1000_v0  ;;  %837 = vmatpush3.bf16.msra.mxu0 %v908_v51 }
 0x1e2   :  { %838 = vmatprep.subr.bf16.mxu0 %v1000_v0 }
 0x1e5   :  { %839 = vmatpush3.bf16.msra.mxu0 %v909_v52 }
 0x1e6   :  { %840 = vmatprep.subr.bf16.mxu0 %v1000_v0 }
 0x1e9   :  { %841 = vmatpush3.bf16.msra.mxu0 %v910_v53 }
 0x1ea   :  { %842 = vmatprep.subr.bf16.mxu0 %v1000_v0 }
 0x1ed   :  { %843 = vmatpush3.bf16.msra.mxu0 %v911_v54 }
 0x1ee   :  { %844 = vmatprep.subr.bf16.mxu0 %v1000_v0 }
 0x1f1   :  { %845 = vmatpush3.bf16.msra.mxu0 %v912_v55 }
 0x1f2   :  { %846 = vmatprep.subr.bf16.mxu0 %v1000_v0 }
 0x1f5   :  { %847 = vmatpush3.bf16.msra.mxu0 %v913_v56 }
 0x1f6   :  { %848 = vmatprep.subr.bf16.mxu0 %v1000_v0 }
 0x1f9   :  { %849 = vmatpush3.bf16.msra.mxu0 %v914_v4 }
 0x1fa   :  { %850 = vmatprep.subr.bf16.mxu0 %v1000_v0 }
 0x1fd   :  { %851 = vmatpush3.bf16.msra.mxu0 %v915_v5 }
 0x2b3   :  { %v319_v60 = vpop.f32.mrb[4].mxu0 }
 0x2b4   :  { %v320_v61 = vadd.f32 %v319_v60, %v236_v59  ;;  %v814_v62 = vpop.f32.mrb[5].mxu0 }
 0x2b5   :  { %v322_v63 = vpop.f32.mrb[6].mxu0 }
 0x2b6   :  { %v325_v1 = vmax.f32 %v320_v61, 0.0  ;;  %v815_v2 = vpop.f32.mrb[7].mxu0 }
 0x2b8   :  { %v344_v3 = vpack.c.bf16 %v325_v1, %v325_v1 }
 0x2ba   :  { %833 = vmatmul.mubr.bf16.vlgmr.msra.gmra.mrb[4].mxu1 %v344_v3 }
 0x2bb   :  { %872 = vmatprep.mubr.msk.bf16.mxu1 %vm1001_vm0, %v1000_v0  ;;  %857 = vmatpush3.bf16.msra.mxu1 %v916_v6 }
 0x2bc   :  { %858 = vmatprep.subr.bf16.mxu1 %v1000_v0 }
 0x2bf   :  { %859 = vmatpush3.bf16.msra.mxu1 %v917_v7 }
 0x2c0   :  { %860 = vmatprep.subr.bf16.mxu1 %v1000_v0 }
 0x2c3   :  { %861 = vmatpush3.bf16.msra.mxu1 %v918_v8 }
 0x2c4   :  { %862 = vmatprep.subr.bf16.mxu1 %v1000_v0 }
 0x2c7   :  { %863 = vmatpush3.bf16.msra.mxu1 %v919_v9 }
 0x2c8   :  { %864 = vmatprep.subr.bf16.mxu1 %v1000_v0 }
 0x2cb   :  { %865 = vmatpush3.bf16.msra.mxu1 %v920_v10 }
 0x2cc   :  { %866 = vmatprep.subr.bf16.mxu1 %v1000_v0 }
 0x2cf   :  { %867 = vmatpush3.bf16.msra.mxu1 %v921_v11 }
 0x2d0   :  { %868 = vmatprep.subr.bf16.mxu1 %v1000_v0 }
 0x2d3   :  { %869 = vmatpush3.bf16.msra.mxu1 %v922_v12 }
 0x2d4   :  { %870 = vmatprep.subr.bf16.mxu1 %v1000_v0 }
 0x2d7   :  { %871 = vmatpush3.bf16.msra.mxu1 %v923_v24 }
 0x38d   :  { %v432_v16 = vpop.f32.mrb[4].mxu1 }
 0x38e   :  { %v433_v17 = vadd.f32 %v432_v16, %v349_v15  ;;  %v834_v18 = vpop.f32.mrb[5].mxu1 }
 0x38f   :  { %v435_v19 = vpop.f32.mrb[6].mxu1 }
 0x390   :  { %v438_v20 = vmax.f32 %v433_v17, 0.0  ;;  %v835_v21 = vpop.f32.mrb[7].mxu1 }
 0x392   :  { %v457_v23 = vpack.c.bf16 %v438_v20, %v438_v20 }
 0x394   :  { %853 = vmatmul.mubr.bf16.vlgmr.msra.gmra.mrb[8].mxu0 %v457_v23 }
 0x467   :  { %v545_v28 = vpop.f32.mrb[8].mxu0 }
 0x468   :  { %v546_v0 = vadd.f32 %v545_v28, %v462_v27  ;;  %v854_v29 = vpop.f32.mrb[9].mxu0 }
 0x469   :  { %v548_v30 = vpop.f32.mrb[10].mxu0 }
 0x46a   :  { %v569_v31 = vpack.c.bf16 %v546_v0, %v546_v0  ;;  %v855_v32 = vpop.f32.mrb[11].mxu0 }
 0x46c   :  { %873 = vmatmul.mubr.bf16.vlgmr.msra.gmra.mrb[8].mxu1 %v569_v31 }
 0x53f   :  { %v657_v36 = vpop.f32.mrb[8].mxu1 }
 0x540   :  { %v658_v37 = vadd.f32 %v657_v36, %v574_v35  ;;  %v874_v38 = vpop.f32.mrb[9].mxu1 }
 0x541   :  { %v660_v39 = vpop.f32.mrb[10].mxu1 }
 0x542   :  { %v875_v40 = vpop.f32.mrb[11].mxu1  ;;  %664 = vst.msk [vmem:[#allocation7] sm:$0xff] %vm663_vm2, %v658_v37 }
 0x543   :  { %979 = shalt.err (!%p976_p6)
}
 0x544   :  { %s980_s10 = scalar_lea.hbm %s1124_s2, 128 }
 0x545   :  { %p981_p7 = scmp.ne.s32.totalorder %s1124_s2, %s980_s10  ;;  %p984_p8 = scmp.lt.u32.totalorder %s980_s10, %s1124_s2 }
 0x547   :  { %p986_p9 = pnand %p984_p8, %p981_p7 }
 0x549   :  { %989 = shalt.err (!%p986_p9)
}
 0x54a   :  { %674 = dma.vmem_to_hbm [thread:$0]  %s672_s6, 128, %s1124_s2, [#allocation4]  }
 0x54b   :  { %994 = dma.done.wait [#allocation4], 128  }
 0x54c   :  { %995 = vsyncadd [#allocation4], 4294967168 }
 0x54d   :  { %678 = vsyncpa [#allocation3], 1 }
 0x54e   :  { %679 = vsyncpa [#allocation6], 1 }
 0x54f   :  { %680 = vsyncpa [#allocation4], 1 }

</bundles_post_ra>
